<compile_context>
chip_gen: v5e
topology: v5e:2x2
jax: 0.10.0
libtpu: 0.0.40
codegen_flags: <defaults>
</compile_context>

<pallas_src>
import functools

import jax
import jax.numpy as jnp
from jax import lax
from jax.experimental import pallas as pl
from jax.experimental.pallas import tpu as pltpu


# --------------------------------------------------------------------------------------
# helpers
# --------------------------------------------------------------------------------------
def _sublane_pack(itemsize):
    # native sublane packing: f32 -> 8, bf16 -> 16, int8/fp8 -> 32
    return {4: 8, 2: 16, 1: 32}.get(int(itemsize), 8)


def _vmem_info(vmem_budget_bytes):
    """(tile-selection budget, compiler vmem_limit_bytes) derived from physical VMEM."""
    try:
        phys = pltpu.get_tpu_info().vmem_capacity_bytes
    except Exception:
        phys = 64 << 20  # v7x per-TC size: safe lower bound for every generation
    vmem_limit = int(phys * 0.85)              # raise the default 16/32 MiB scoped limit
    if vmem_budget_bytes is None:
        vmem_budget_bytes = int(phys * 0.60)   # headroom for compiler scratch / pipelining
    return int(vmem_budget_bytes), vmem_limit


def _pick_channel_tile(C, d0, d1, itemsize, budget):
    """Largest divisor of C that is a multiple of the sublane pack, fits `budget`
    and (preferably) leaves >= 4 grid steps. None -> even ct=min doesn't fit."""
    sub = _sublane_pack(itemsize)
    cands = sorted([d for d in range(sub, C + 1, sub) if C % d == 0], reverse=True)
    if not cands:
        cands = [C]  # full-channel block is always layout-legal

    def footprint(ct):
        io = 3 * 2 * d0 * ct * d1 * itemsize      # 2 in + 1 out, double-buffered
        tmp = 2 * d0 * ct * d1 * 4                # transient f32 slab temporaries
        params = 4 * 2 * ct * 4                   # gamma/beta blocks (negligible)
        return io + tmp + params

    fitting = [d for d in cands if footprint(d) <= budget]
    if not fitting:
        return None
    for steps in (4, 2, 1):                       # prefer enough steps for pipelining
        piped = [d for d in fitting if C // d >= steps]
        if piped:
            return piped[0]
    return fitting[0]


def _pick_two_pass_tiles(C, d0, d1, itemsize, budget):
    """(ct, nt) for the two-pass path: channel tile x spatial (lane) tile."""
    sub = _sublane_pack(itemsize)
    ct_cands = sorted([d for d in range(sub, C + 1, sub) if C % d == 0], reverse=True) or [C]
    nt_cands = sorted([n for n in range(128, d1 + 1, 128) if d1 % n == 0], reverse=True) or [d1]

    def footprint(ct, nt):
        return 3 * 2 * d0 * ct * nt * itemsize + 2 * d0 * ct * nt * 4

    best = None
    for ct in ct_cands:
        for nt in nt_cands:
            if footprint(ct, nt) <= budget:
                if best is None or ct * nt > best[0] * best[1]:
                    best = (ct, nt)
    if best is None:                              # best effort: smallest legal blocks
        best = (ct_cands[-1], nt_cands[-1])
    return best


# --------------------------------------------------------------------------------------
# kernels
# --------------------------------------------------------------------------------------
def _aan_fused_kernel(xc_ref, xd_ref, g_ref, b_ref, o_ref, *, eps):
    # xc/xd/o: (d0, ct, d1) slab holding ALL data of this channel tile
    # g/b:     (ct, 1) affine parameters
    s = xc_ref[...].astype(jnp.float32) + xd_ref[...].astype(jnp.float32)
    cnt = jnp.float32(s.shape[0] * s.shape[2])
    # per-channel mean over (batch, spatial)
    mean = jnp.sum(jnp.sum(s, axis=0), axis=-1, keepdims=True) / cnt          # (ct, 1)
    # centered form for the variance (numerically safe); `centered` is only a
    # transient for the reduction -- the output pass below reads `s` directly.
    centered = s - mean[None]
    var = jnp.sum(jnp.sum(centered * centered, axis=0), axis=-1, keepdims=True) / cnt
    scale = lax.rsqrt(var + eps) * g_ref[...].astype(jnp.float32)             # (ct, 1)
    shift = b_ref[...].astype(jnp.float32) - mean * scale                     # (ct, 1)
    # folded affine: single multiply-add pass over the slab
    o_ref[...] = (s * scale[None] + shift[None]).astype(o_ref.dtype)


def _aan_stats_kernel(xc_ref, xd_ref, sum_ref, sq_ref):
    # grid = (channel tiles, spatial tiles); spatial axis is the (last) reduction axis.
    s = xc_ref[...].astype(jnp.float32) + xd_ref[...].astype(jnp.float32)
    psum = jnp.sum(jnp.sum(s, axis=0), axis=-1, keepdims=True)                # (ct, 1)
    psq = jnp.sum(jnp.sum(s * s, axis=0), axis=-1, keepdims=True)             # (ct, 1)

    @pl.when(pl.program_id(1) == 0)
    def _():
        sum_ref[...] = jnp.zeros_like(sum_ref)
        sq_ref[...] = jnp.zeros_like(sq_ref)

    sum_ref[...] += psum
    sq_ref[...] += psq


def _aan_norm_kernel(scale_ref, shift_ref, xc_ref, xd_ref, o_ref):
    s = xc_ref[...].astype(jnp.float32) + xd_ref[...].astype(jnp.float32)
    o_ref[...] = (s * scale_ref[...][None] + shift_ref[...][None]).astype(o_ref.dtype)


# --------------------------------------------------------------------------------------
# pallas_call wrappers
# --------------------------------------------------------------------------------------
def _aan_single_pass(xc3, xd3, g, b, ct, eps, vmem_limit):
    d0, C, d1 = xc3.shape
    itemsize = xc3.dtype.itemsize
    grid = (C // ct,)
    total = d0 * C * d1
    return pl.pallas_call(
        functools.partial(_aan_fused_kernel, eps=eps),
        out_shape=jax.ShapeDtypeStruct((d0, C, d1), xc3.dtype),
        grid_spec=pltpu.PrefetchScalarGridSpec(
            num_scalar_prefetch=0,
            grid=grid,
            in_specs=[
                pl.BlockSpec((d0, ct, d1), lambda c: (0, c, 0)),
                pl.BlockSpec((d0, ct, d1), lambda c: (0, c, 0)),
                pl.BlockSpec((ct, 1), lambda c: (c, 0)),
                pl.BlockSpec((ct, 1), lambda c: (c, 0)),
            ],
            out_specs=pl.BlockSpec((d0, ct, d1), lambda c: (0, c, 0)),
        ),
        compiler_params=pltpu.CompilerParams(
            dimension_semantics=("parallel",),
            vmem_limit_bytes=vmem_limit,
        ),
        cost_estimate=pl.CostEstimate(
            flops=int(7 * total),
            transcendentals=int(C),
            bytes_accessed=int(3 * total * itemsize),
        ),
    )(xc3, xd3, g, b)


def _aan_two_pass(xc3, xd3, g, b, eps, budget, vmem_limit):
    d0, C, d1 = xc3.shape
    itemsize = xc3.dtype.itemsize
    ct, nt = _pick_two_pass_tiles(C, d0, d1, itemsize, budget)
    grid = (C // ct, d1 // nt)
    total = d0 * C * d1

    # pass 1: per-channel sum / sum-of-squares, accumulated across the spatial axis
    sums, sqs = pl.pallas_call(
        _aan_stats_kernel,
        out_shape=(
            jax.ShapeDtypeStruct((C, 1), jnp.float32),
            jax.ShapeDtypeStruct((C, 1), jnp.float32),
        ),
        grid_spec=pltpu.PrefetchScalarGridSpec(
            num_scalar_prefetch=0,
            grid=grid,
            in_specs=[
                pl.BlockSpec((d0, ct, nt), lambda c, s: (0, c, s)),
                pl.BlockSpec((d0, ct, nt), lambda c, s: (0, c, s)),
            ],
            out_specs=[
                pl.BlockSpec((ct, 1), lambda c, s: (c, 0)),
                pl.BlockSpec((ct, 1), lambda c, s: (c, 0)),
            ],
        ),
        compiler_params=pltpu.CompilerParams(
            dimension_semantics=("parallel", "arbitrary"),
            vmem_limit_bytes=vmem_limit,
        ),
        cost_estimate=pl.CostEstimate(
            flops=int(4 * total),
            transcendentals=0,
            bytes_accessed=int(2 * total * itemsize),
        ),
    )(xc3, xd3)

    # tiny per-channel math in plain JAX (C elements).
    # TODO(synk): E[x^2]-mean^2 can cancel for large-mean inputs; Welford-style chunk
    # merging would be the fully robust variant if that ever matters here.
    cnt = jnp.float32(d0 * d1)
    mean = sums / cnt
    var = jnp.maximum(sqs / cnt - mean * mean, 0.0)     # biased variance (PyTorch norm)
    scale = g * lax.rsqrt(var + eps)                    # (C, 1)
    shift = b - mean * scale                            # (C, 1)

    # pass 2: normalize + affine
    return pl.pallas_call(
        _aan_norm_kernel,
        out_shape=jax.ShapeDtypeStruct((d0, C, d1), xc3.dtype),
        grid_spec=pltpu.PrefetchScalarGridSpec(
            num_scalar_prefetch=0,
            grid=grid,
            in_specs=[
                pl.BlockSpec((ct, 1), lambda c, s: (c, 0)),
                pl.BlockSpec((ct, 1), lambda c, s: (c, 0)),
                pl.BlockSpec((d0, ct, nt), lambda c, s: (0, c, s)),
                pl.BlockSpec((d0, ct, nt), lambda c, s: (0, c, s)),
            ],
            out_specs=pl.BlockSpec((d0, ct, nt), lambda c, s: (0, c, s)),
        ),
        compiler_params=pltpu.CompilerParams(
            dimension_semantics=("parallel", "parallel"),
            vmem_limit_bytes=vmem_limit,
        ),
        cost_estimate=pl.CostEstimate(
            flops=int(3 * total),
            transcendentals=0,
            bytes_accessed=int(3 * total * itemsize),
        ),
    )(scale, shift, xc3, xd3)


def aan_pallas(x_ccd, x_dem, gamma, beta, *, eps=1e-5,
               vmem_budget_bytes=None, force_two_pass=False):
    """AaN forward: BatchNorm2d(x_ccd + x_dem) with batch statistics (training mode).

    x_ccd, x_dem: [B, C, H, W] (NCHW). gamma, beta: [C]. Returns [B, C, H, W].
    """
    B, C, H, W = x_ccd.shape
    N = H * W
    itemsize = x_ccd.dtype.itemsize
    budget, vmem_limit = _vmem_info(vmem_budget_bytes)

    # Layout: keep the lane dim >= 128 where possible.
    if N < 128 and B * N >= 128:
        # small spatial maps: ONE transpose to fold batch into lanes -> lane-dense stores
        xc3 = jnp.transpose(x_ccd.reshape(B, C, N), (1, 0, 2)).reshape(1, C, B * N)
        xd3 = jnp.transpose(x_dem.reshape(B, C, N), (1, 0, 2)).reshape(1, C, B * N)
        d0, d1 = 1, B * N
        folded = True
    else:
        # contiguous reshape, no extra HBM pass; N stays on lanes
        xc3 = x_ccd.reshape(B, C, N)
        xd3 = x_dem.reshape(B, C, N)
        d0, d1 = B, N
        folded = False

    g = gamma.reshape(C, 1).astype(jnp.float32)
    b = beta.reshape(C, 1).astype(jnp.float32)

    ct = _pick_channel_tile(C, d0, d1, itemsize, budget)
    if force_two_pass or ct is None:
        out3 = _aan_two_pass(xc3, xd3, g, b, eps, budget, vmem_limit)
    else:
        out3 = _aan_single_pass(xc3, xd3, g, b, ct, eps, vmem_limit)

    if folded:
        out = jnp.transpose(out3.reshape(C, B, N), (1, 0, 2)).reshape(B, C, H, W)
    else:
        out = out3.reshape(B, C, H, W)
    return out


# --------------------------------------------------------------------------------------
# pure-JAX reference (matches PyTorch AaN.forward, training-mode BatchNorm2d)
# --------------------------------------------------------------------------------------
def _reference(x_ccd, x_dem, gamma, beta, eps=1e-5):
    s = x_ccd + x_dem
    mean = jnp.mean(s, axis=(0, 2, 3), keepdims=True)
    var = jnp.mean((s - mean) ** 2, axis=(0, 2, 3), keepdims=True)   # biased variance
    xhat = (s - mean) / jnp.sqrt(var + eps)
    return gamma.reshape(1, -1, 1, 1) * xhat + beta.reshape(1, -1, 1, 1)


if __name__ == "__main__":
    key = jax.random.PRNGKey(0)
    ks = jax.random.split(key, 4)

    def make_inputs(B, C, H, W):
        xc = jax.random.normal(ks[0], (B, C, H, W), dtype=jnp.float32)
        xd = jax.random.normal(ks[1], (B, C, H, W), dtype=jnp.float32)
        g = 1.0 + 0.1 * jax.random.normal(ks[2], (C,), dtype=jnp.float32)
        bb = 0.1 * jax.random.normal(ks[3], (C,), dtype=jnp.float32)
        return xc, xd, g, bb

    # 1) fused single-pass path (N >= 128, lane-dense as-is, grid of 4 channel tiles)
    xc, xd, g, b = make_inputs(2, 32, 16, 16)
    out = jax.block_until_ready(aan_pallas(xc, xd, g, b))
    ref = _reference(xc, xd, g, b)
    assert out.shape == ref.shape
    assert jnp.allclose(out, ref, atol=1e-4, rtol=1e-4), "single-pass mismatch"

    # 2) two-pass scale-out path (forced with a tiny budget -> multiple spatial steps,
    #    exercising the resident sum/sumsq accumulator)
    out2 = jax.block_until_ready(
        aan_pallas(xc, xd, g, b, force_two_pass=True, vmem_budget_bytes=1 << 16))
    assert jnp.allclose(out2, ref, atol=1e-4, rtol=1e-4), "two-pass mismatch"

    # 3) small-N layout (N < 128): batch folded into the lane dim with one transpose
    xcs, xds, gs, bs = make_inputs(8, 16, 4, 4)
    out3 = jax.block_until_ready(aan_pallas(xcs, xds, gs, bs))
    ref3 = _reference(xcs, xds, gs, bs)
    assert jnp.allclose(out3, ref3, atol=1e-4, rtol=1e-4), "small-N mismatch"

    print("KERNEL_OK")
</pallas_src>

<mosaic_0001>
module attributes {stable_mosaic.version = 11 : i64} {
  func.func @_aan_fused_kernel(%arg0: i32, %arg1: memref<2x8x256xf32, #tpu.memory_space<vmem>>, %arg2: memref<2x8x256xf32, #tpu.memory_space<vmem>>, %arg3: memref<8x1xf32, #tpu.memory_space<vmem>>, %arg4: memref<8x1xf32, #tpu.memory_space<vmem>>, %arg5: memref<2x8x256xf32, #tpu.memory_space<vmem>>) attributes {dimension_semantics = [#tpu.dimension_semantics<parallel>], iteration_bounds = array<i64: 4>, scalar_prefetch = 0 : i64, scratch_operands = 0 : i64, tpu.core_type = #tpu.core_type<tc>, window_params = [{transform_indices = @transform_0, window_bounds = array<i64: 2, 8, 256>}, {transform_indices = @transform_1, window_bounds = array<i64: 2, 8, 256>}, {transform_indices = @transform_2, window_bounds = array<i64: 8, 1>}, {transform_indices = @transform_3, window_bounds = array<i64: 8, 1>}, {transform_indices = @transform_4, window_bounds = array<i64: 2, 8, 256>}]} {
    %c0 = arith.constant 0 : index
    %c0_0 = arith.constant 0 : index
    %c0_1 = arith.constant 0 : index
    %0 = vector.load %arg1[%c0, %c0_0, %c0_1] : memref<2x8x256xf32, #tpu.memory_space<vmem>>, vector<2x8x256xf32>
    %c0_2 = arith.constant 0 : index
    %c0_3 = arith.constant 0 : index
    %c0_4 = arith.constant 0 : index
    %1 = vector.load %arg2[%c0_2, %c0_3, %c0_4] : memref<2x8x256xf32, #tpu.memory_space<vmem>>, vector<2x8x256xf32>
    %2 = arith.addf %0, %1 : vector<2x8x256xf32>
    %cst = arith.constant dense<0.000000e+00> : vector<8x256xf32>
    %3 = vector.multi_reduction <add>, %2, %cst [0] : vector<2x8x256xf32> to vector<8x256xf32>
    %cst_5 = arith.constant dense<0.000000e+00> : vector<8xf32>
    %4 = vector.multi_reduction <add>, %3, %cst_5 [1] : vector<8x256xf32> to vector<8xf32>
    %5 = vector.shape_cast %4 : vector<8xf32> to vector<8x1xf32>
    %cst_6 = arith.constant 5.120000e+02 : f32
    %6 = vector.broadcast %cst_6 : f32 to vector<8x1xf32>
    %7 = arith.divf %5, %6 : vector<8x1xf32>
    %8 = vector.shape_cast %7 : vector<8x1xf32> to vector<1x8x1xf32>
    %9 = vector.broadcast %8 : vector<1x8x1xf32> to vector<2x8x256xf32>
    %10 = arith.subf %2, %9 : vector<2x8x256xf32>
    %11 = arith.mulf %10, %10 : vector<2x8x256xf32>
    %cst_7 = arith.constant dense<0.000000e+00> : vector<8x256xf32>
    %12 = vector.multi_reduction <add>, %11, %cst_7 [0] : vector<2x8x256xf32> to vector<8x256xf32>
    %cst_8 = arith.constant dense<0.000000e+00> : vector<8xf32>
    %13 = vector.multi_reduction <add>, %12, %cst_8 [1] : vector<8x256xf32> to vector<8xf32>
    %14 = vector.shape_cast %13 : vector<8xf32> to vector<8x1xf32>
    %cst_9 = arith.constant 5.120000e+02 : f32
    %15 = vector.broadcast %cst_9 : f32 to vector<8x1xf32>
    %16 = arith.divf %14, %15 : vector<8x1xf32>
    %cst_10 = arith.constant 9.99999974E-6 : f32
    %17 = vector.broadcast %cst_10 : f32 to vector<8x1xf32>
    %18 = arith.addf %16, %17 : vector<8x1xf32>
    %19 = math.rsqrt %18 : vector<8x1xf32>
    %c0_11 = arith.constant 0 : index
    %c0_12 = arith.constant 0 : index
    %20 = vector.load %arg3[%c0_11, %c0_12] : memref<8x1xf32, #tpu.memory_space<vmem>>, vector<8x1xf32>
    %21 = arith.mulf %19, %20 : vector<8x1xf32>
    %c0_13 = arith.constant 0 : index
    %c0_14 = arith.constant 0 : index
    %22 = vector.load %arg4[%c0_13, %c0_14] : memref<8x1xf32, #tpu.memory_space<vmem>>, vector<8x1xf32>
    %23 = arith.mulf %7, %21 : vector<8x1xf32>
    %24 = arith.subf %22, %23 : vector<8x1xf32>
    %25 = vector.shape_cast %21 : vector<8x1xf32> to vector<1x8x1xf32>
    %26 = vector.broadcast %25 : vector<1x8x1xf32> to vector<2x8x256xf32>
    %27 = arith.mulf %2, %26 : vector<2x8x256xf32>
    %28 = vector.shape_cast %24 : vector<8x1xf32> to vector<1x8x1xf32>
    %29 = vector.broadcast %28 : vector<1x8x1xf32> to vector<2x8x256xf32>
    %30 = arith.addf %27, %29 : vector<2x8x256xf32>
    %c0_15 = arith.constant 0 : index
    %c0_16 = arith.constant 0 : index
    %c0_17 = arith.constant 0 : index
    %31 = vector.load %arg5[%c0_15, %c0_16, %c0_17] : memref<2x8x256xf32, #tpu.memory_space<vmem>>, vector<2x8x256xf32>
    tpu.vector_store %arg5[%c0_15, %c0_16, %c0_17], %30 {strides = array<i32>} : memref<2x8x256xf32, #tpu.memory_space<vmem>>, vector<2x8x256xf32>,
    return
  }
  func.func @transform_0(%arg0: i32) -> (i32, i32, i32) {
    %c0_i32 = arith.constant 0 : i32
    %c0_i32_0 = arith.constant 0 : i32
    %c0_i32_1 = arith.constant 0 : i32
    return %c0_i32, %arg0, %c0_i32_0 : i32, i32, i32
  }
  func.func @transform_1(%arg0: i32) -> (i32, i32, i32) {
    %c0_i32 = arith.constant 0 : i32
    %c0_i32_0 = arith.constant 0 : i32
    %c0_i32_1 = arith.constant 0 : i32
    return %c0_i32, %arg0, %c0_i32_0 : i32, i32, i32
  }
  func.func @transform_2(%arg0: i32) -> (i32, i32) {
    %c0_i32 = arith.constant 0 : i32
    %c0_i32_0 = arith.constant 0 : i32
    return %arg0, %c0_i32 : i32, i32
  }
  func.func @transform_3(%arg0: i32) -> (i32, i32) {
    %c0_i32 = arith.constant 0 : i32
    %c0_i32_0 = arith.constant 0 : i32
    return %arg0, %c0_i32 : i32, i32
  }
  func.func @transform_4(%arg0: i32) -> (i32, i32, i32) {
    %c0_i32 = arith.constant 0 : i32
    %c0_i32_0 = arith.constant 0 : i32
    %c0_i32_1 = arith.constant 0 : i32
    return %c0_i32, %arg0, %c0_i32_0 : i32, i32, i32
  }
}

</mosaic_0001>

<bundles_post_ra>
// kernel: tpu_custom_call.1
= control target key start
LH: loop header
LB: loop body
LE: loop exit
PB: predicated region body
PF: predicated region fallthrough
CT: control target
= control target key end

     0   :  { %s959_s0 = inlined_call_operand.hbm [shape: f32[2,32,256], index: 0, kind: input, shape index: {}]   ;;  %s960_s1 = inlined_call_operand.hbm [shape: f32[2,32,256], index: 1, kind: input, shape index: {}]   ;;  %s961_s2 = inlined_call_operand.vmem [shape: f32[32,1], index: 2, kind: input, shape index: {}]   ;;  %s962_s3 = inlined_call_operand.vmem [shape: f32[32,1], index: 3, kind: input, shape index: {}]   ;;  %s963_s4 = inlined_call_operand.hbm [shape: f32[2,32,256], index: 4, kind: output, shape index: {}]  }
   0x1   :  { %966 = sst [smem:[#allocation13_spill]] %s959_s0 }
   0x2   :  { %9 = vsyncpa [#allocation3], 0 }
   0x3   :  { %11 = vsyncpa [#allocation3 + $0x1], 0 }
   0x4   :  { %12 = vsyncpa [#allocation6], 0 }
   0x5   :  { %14 = vsyncpa [#allocation6 + $0x1], 0 }
   0x6   :  { %15 = vsyncpa [#allocation4], 0 }
   0x7   :  { %17 = vsyncpa [#allocation4 + $0x1], 0  ;;  %s760_s15 = smov 0   ;;  %s762_s16 = smov 0  }
   0x8   :  { %s764_s17 = smov 0   ;;  %s766_s18 = smov 0  }
   0x9 LB: > { %967 = sst [smem:[#allocation11_spill]] %s721_s17  ;;  %s781_s19 = sadd.s32 4294967295, %s725_s18   ;;  %s725_s18 = sphi %s766_s18, %s981_s18   ;;  %s721_s17 = sphi %s764_s17, %s978_s17   ;;  %s717_s16 = sphi %s762_s16, %s980_s16   ;;  %s713_s15 = sphi %s760_s15, %s979_s15  }
   0xa   : > { %s507_s20 = sadd.s32 4294967294, %s725_s18   ;;  %s785_s21 = sadd.s32 1, %s725_s18  }
   0xb   : > { %s30_s22 = sadd.s32 1, %s721_s17  ;;  %s27_s23 = ssub.s32 %s725_s18, %s785_s21 }
   0xc   : > { %p37_p0 = scmp.ne.s32.totalorder %s721_s17, %s717_s16  ;;  %p28_p1 = scmp.eq.s32.totalorder %s27_s23, 0 }
   0xd   : > { %p38_p2 = scmp.eq.s32.totalorder %s725_s18, 0  ;;  %p43_p3 = scmp.ne.s32.totalorder %s717_s16, %s713_s15 }
   0xe   : > { %p44_p4 = scmp.eq.s32.totalorder %s781_s19, 0  ;;  %p145_p7 = scmp.eq.s32.totalorder %s781_s19, 3 }
   0xf   : > { %s797_s24 = scalar_select %p28_p1, %s721_s17, %s30_s22  }
  0x10   : > { %p799_p5 = por %p38_p2, %p37_p0  ;;  %p803_p6 = por %p44_p4, %p43_p3 }
  0x11   : > { %968 = sst [smem:[#allocation12_spill]] %s797_s24  ;;  %p151_p8 = scmp.eq.s32.totalorder %s507_s20, 3 }
  0x12   : > { %p547_p9 = scmp.lt.s32.totalorder %s725_s18, 4  ;;  %p809_p10 = por %p145_p7, %p37_p0 }
  0x13   : > { %p813_p11 = por %p151_p8, %p43_p3  ;;  %s818_s29 = sand.u32 1, %s721_s17  }
  0x14   : > { %s527_s30 = sshll.u32 %s725_s18, 4  ;;  %s964_s5 = sshll.u32 %s818_s29, 5 }
  0x15   : > { %s973_s0 = sld [smem:[#allocation13_spill]]  ;;  %s175_s10 = scalar_lea.vmem [#allocation2], %s964_s5 }
  0x16   : > { %s183_s11 = sshll.u32 %s175_s10, 4  ;;  %p831_p12 = pnand %p547_p9, %p799_p5  ;;  %s184_s11 = int_to_ptr.vmem [resolvable:$true] %s183_s11 }
  0x17   : > { %p516_p13 = scmp.ge.s32.totalorder %s725_s18, 1  ;;  %s172_s13 = scalar_lea.sflag [#allocation3], %s818_s29 }
  0x18   : > { %p599_p1 = pneg %p831_p12 }
  0x1b   : > { %s180_s8 = scalar_lea.hbm %s973_s0, %s527_s30  ;;  %s602_s25 = scalar_lea.hbm %s973_s0, 128 }
  0x1c   : > { %s181_s9 = sshll.u32 %s180_s8, 4  ;;  %s182_s9 = int_to_ptr.hbm [resolvable:$true] %s181_s9 }
  0x1d   : > { %s595_s14 = sshra.s32 %s182_s9, 4  ;;  %s596_s14 = int_to_ptr.hbm [resolvable:$true] %s595_s14 }
  0x1e   : > { %s597_s20 = scalar_lea.hbm %s596_s14, 32  ;;  %p603_p4 = scmp.lt.s32.totalorder %s596_s14, %s973_s0 }
  0x1f   : > { %p598_p0 = scmp.ne.s32.totalorder %s596_s14, %s597_s20  ;;  %p604_p5 = scmp.lt.s32.totalorder %s602_s25, %s597_s20 }
  0x21   : > { %p600_p2 = pnand %p599_p1, %p598_p0  ;;  %p605_p7 = por %p604_p5, %p603_p4 }
  0x23   : > { %p601_p3 = pneg %p600_p2 }
  0x25   : > { %p606_p8 = pnand %p605_p7, %p601_p3 }
  0x27   : > { %609 = shalt.err (!%p606_p8)
}
  0x28   : > { %s727_s8 = smov 1024   ;;  %s728_s10 = smov 256  }
  0x29   : > { %s729_s5 = smov 16   ;;  %p227_p9 = scmp.lt.s32.totalorder %s725_s18, 5 }
  0x2a   : > { %539 = dma.hbm_to_vmem [thread:$0]  (!%p831_p12), %s182_s9, 512, %s184_s11, %s172_s13, %s727_s8, %s728_s10, %s729_s5  }
  0x2b   : > { %s202_s22 = scalar_lea.hbm %s960_s1, %s527_s30  ;;  %p859_p0 = pnand %p516_p13, %p227_p9 }
  0x2c   : > { %s203_s25 = sshll.u32 %s202_s22, 4  ;;  %s976_s6 = sshll.u32 %s818_s29, 5  ;;  %s204_s25 = int_to_ptr.hbm [resolvable:$true] %s203_s25 }
  0x2d   : > { %s197_s7 = scalar_lea.vmem [#allocation5], %s976_s6  ;;  %s194_s24 = scalar_lea.sflag [#allocation6], %s818_s29 }
  0x2e   : > { %s205_s0 = sshll.u32 %s197_s7, 4  ;;  %s625_s17 = sshra.s32 %s204_s25, 4  ;;  %s206_s0 = int_to_ptr.vmem [resolvable:$true] %s205_s0  ;;  %s626_s17 = int_to_ptr.hbm [resolvable:$true] %s625_s17 }
  0x2f   : > { %s627_s9 = scalar_lea.hbm %s626_s17, 32  ;;  %s632_s13 = scalar_lea.hbm %s960_s1, 128 }
  0x30   : > { %p628_p2 = scmp.ne.s32.totalorder %s626_s17, %s627_s9  ;;  %p633_p13 = scmp.lt.s32.totalorder %s626_s17, %s960_s1 }
  0x31   : > { %p634_p5 = scmp.lt.s32.totalorder %s632_s13, %s627_s9 }
  0x32   : > { %p630_p3 = pnand %p628_p2, %p599_p1 }
  0x33   : > { %p635_p7 = por %p634_p5, %p633_p13 }
  0x34   : > { %p631_p4 = pneg %p630_p3 }
  0x36   : > { %p636_p8 = pnand %p635_p7, %p631_p4 }
  0x38   : > { %639 = shalt.err (!%p636_p8)
}
  0x39   : > { %542 = dma.hbm_to_vmem [thread:$0]  (!%p831_p12), %s204_s25, 512, %s206_s0, %s194_s24, %s727_s8, %s728_s10, %s729_s5  }
  0x3a   : > { %231 = sbr.rel (%p859_p0) target bundleno = 474 (0x1da), region = 36  ;;  %s881_s29 = sand.u32 (!%p859_p0), 1, %s717_s16  }
  0x3b   : > { %s884_s22 = sshll.u32 (!%p859_p0), %s881_s29, 5  ;;  %s234_s17 = scalar_lea.sflag (!%p859_p0), [#allocation3], %s881_s29 }
  0x3c   : > { %s237_s6 = scalar_lea.vmem (!%p859_p0), [#allocation2], %s884_s22 }
  0x3f   : > { %700 = dma.done.wait (%p803_p6), %s234_s17, 512  }
  0x40   : > { %702 = vsyncadd (%p803_p6), %s234_s17, 4294966784  ;;  %s244_s0 = scalar_lea.sflag [#allocation6], %s881_s29  ;;  %s247_s24 = scalar_lea.vmem [#allocation5], %s884_s22 }
  0x41   : > { %704 = dma.done.wait (%p803_p6), %s244_s0, 512  }
  0x42   : > { %706 = vsyncadd (%p803_p6), %s244_s0, 4294966784  ;;  %v294_v0 = vld [vmem:[%s237_s6] sm:$0xff]  ;;  %v295_v1 = vld [vmem:[%s237_s6 + $0x8] sm:$0xff]  ;;  %v730_v15 = vmov 512.0   ;;  %v731_v35 = vmov 0   ;;  %p286_p6 = scmp.lt.s32.totalorder %s781_s19, 3 }
  0x43   : > { %v296_v2 = vld [vmem:[%s237_s6 + $0x10] sm:$0xff]  ;;  %v297_v3 = vld [vmem:[%s237_s6 + $0x18] sm:$0xff]  ;;  %v298_v4 = vld [vmem:[%s247_s24] sm:$0xff]  ;;  %591 = vrcp.f32 %v730_v15  ;;  %589 = vset.pattern.permute.xlu1 %v731_v35  ;;  %590 = vset.pattern.permute.xlu0 %v731_v35  ;;  %s529_s9 = sshll.u32 %s781_s19, 4  ;;  %s285_s14 = scalar_lea.vmem [#allocation7], %s884_s22 }
  0x44   : > { %v299_v5 = vld [vmem:[%s247_s24 + $0x8] sm:$0xff]  ;;  %v300_v6 = vld [vmem:[%s247_s24 + $0x10] sm:$0xff]  ;;  %v301_v7 = vld [vmem:[%s247_s24 + $0x18] sm:$0xff]  ;;  %v898_v8 = vadd.f32 %v298_v4, %v294_v0  ;;  %s287_s26 = scalar_select %p286_p6, %s781_s19, 3 }
  0x45   : > { %v900_v9 = vadd.f32 %v299_v5, %v295_v1  ;;  %v902_v10 = vadd.f32 %v300_v6, %v296_v2  ;;  %v904_v11 = vadd.f32 %v301_v7, %v297_v3  ;;  %s383_s13 = scalar_lea.hbm %s963_s4, %s529_s9  ;;  %s384_s20 = sshll.u32 %s285_s14, 4  ;;  %s385_s20 = int_to_ptr.vmem [resolvable:$true] %s384_s20 }
  0x46   : > { %s520_s5 = sshll.u32 %s287_s26, 3  ;;  %s386_s17 = sshll.u32 %s383_s13, 4  ;;  %s387_s17 = int_to_ptr.hbm [resolvable:$true] %s386_s17 }
  0x47   : > { %v306_v12 = vadd.f32 %v902_v10, %v898_v8  ;;  %v307_v13 = vadd.f32 %v904_v11, %v900_v9  ;;  %s289_s10 = scalar_lea.vmem %s961_s2, %s520_s5  ;;  %s293_s7 = scalar_lea.vmem %s962_s3, %s520_s5 }
  0x48   : > { %v344_v45 = vld [vmem:[%s289_s10] sm:$0xff]  ;;  %s372_s19 = scalar_lea.sflag [#allocation4], %s881_s29  ;;  %s669_s6 = sshra.s32 %s387_s17, 4  ;;  %s670_s6 = int_to_ptr.hbm [resolvable:$true] %s669_s6 }
  0x49   : > { %v308_v14 = vadd.f32 %v307_v13, %v306_v12  ;;  %v592_v16 = vpop.eup %591  ;;  %v346_v49 = vld [vmem:[%s293_s7] sm:$0xff]  ;;  %s671_s22 = scalar_lea.hbm %s670_s6, 32  ;;  %s675_s26 = scalar_lea.hbm %s963_s4, 128 }
  0x4a   : > { %v312_v17 = vmul.f32 512.0, %v592_v16  ;;  %vm316_vm0 = vweird.f32 %v592_v16  ;;  %p672_p12 = scmp.ne.s32.totalorder %s670_s6, %s671_s22  ;;  %p676_p0 = scmp.lt.s32.totalorder %s670_s6, %s963_s4 }
  0x4b   : > { %309 = vadd.xlane.f32.xlu0 %v308_v14  ;;  %p677_p2 = scmp.lt.s32.totalorder %s675_s26, %s671_s22 }
  0x4c   : > { %v313_v18 = vsub.f32 1.0, %v312_v17  ;;  %p673_p1 = pnand %p672_p12, %p809_p10 }
  0x4d   : > { %p678_p3 = por %p677_p2, %p676_p0 }
  0x4e   : > { %v314_v19 = vmul.f32 %v592_v16, %v313_v18  ;;  %p674_p9 = pneg %p673_p1 }
  0x50   : > { %v315_v20 = vadd.f32 %v592_v16, %v314_v19  ;;  %p679_p4 = pnand %p678_p3, %p674_p9 }
  0x52   : > { %v317_v21 = vsel %vm316_vm0, %v592_v16, %v315_v20 }
  0xbe   : > { %v310_v22 = vpop.xlane.xlu0 %309 }
  0xbf   : > { %v318_v23 = vmul.f32 %v317_v21, %v310_v22 }
  0xc1   : > { %v319_v24 = vsub.f32 %v898_v8, %v318_v23  ;;  %v320_v25 = vsub.f32 %v900_v9, %v318_v23  ;;  %v321_v26 = vsub.f32 %v902_v10, %v318_v23  ;;  %v322_v27 = vsub.f32 %v904_v11, %v318_v23 }
  0xc3   : > { %v323_v28 = vmul.f32 %v319_v24, %v319_v24  ;;  %v324_v29 = vmul.f32 %v320_v25, %v320_v25  ;;  %v325_v30 = vmul.f32 %v321_v26, %v321_v26  ;;  %v326_v31 = vmul.f32 %v322_v27, %v322_v27 }
  0xc5   : > { %v327_v32 = vadd.f32 %v325_v30, %v323_v28  ;;  %v328_v33 = vadd.f32 %v326_v31, %v324_v29 }
  0xc7   : > { %v329_v34 = vadd.f32 %v328_v33, %v327_v32 }
  0xc9   : > { %330 = vadd.xlane.f32.xlu0 %v329_v34 }
 0x13c   : > { %v331_v36 = vpop.xlane.xlu0 %330 }
 0x13d   : > { %v332_v37 = vmul.f32 %v331_v36, %v317_v21 }
 0x13f   : > { %v333_v38 = vadd.f32 1e-05, %v332_v37 }
 0x141   : > { %593 = vrsqrt.f32 %v333_v38  ;;  %vm340_vm2 = vweird.f32 %v333_v38 }
 0x147   : > { %v594_v39 = vpop.eup %593 }
 0x148   : > { %v335_v40 = vmul.f32 %v594_v39, %v333_v38  ;;  %vm341_vm1 = vweird.f32 %v594_v39 }
 0x149   : > { %vm342_vm3 = vmor %vm340_vm2, %vm341_vm1 }
 0x14a   : > { %v336_v41 = vmul.f32 %v594_v39, %v335_v40 }
 0x14c   : > { %v337_v42 = vmul.f32 0.5, %v336_v41 }
 0x14e   : > { %v338_v43 = vsub.f32 1.5, %v337_v42 }
 0x150   : > { %v339_v44 = vmul.f32 %v594_v39, %v338_v43 }
 0x152   : > { %v343_v46 = vsel %vm342_vm3, %v594_v39, %v339_v44 }
 0x153   : > { %v345_v47 = vmul.f32 %v344_v45, %v343_v46 }
 0x155   : > { %351 = vperm.xlu1 %589, %v345_v47   ;;  %v347_v48 = vmul.f32 %v345_v47, %v318_v23 }
 0x157   : > { %v348_v50 = vsub.f32 %v346_v49, %v347_v48 }
 0x15d   : > { %360 = vperm.xlu1 %589, %v348_v50  }
 0x1c7   : > { %v352_v51 = vpop.permute.xlu1 %351 }
 0x1c8   : > { %v354_v52 = vmul.f32 %v352_v51, %v898_v8  ;;  %v355_v53 = vmul.f32 %v352_v51, %v900_v9  ;;  %v356_v54 = vmul.f32 %v352_v51, %v902_v10  ;;  %v357_v55 = vmul.f32 %v352_v51, %v904_v11 }
 0x1cf   : > { %v361_v56 = vpop.permute.xlu1 %360 }
 0x1d0   : > { %v363_v57 = vadd.f32 %v361_v56, %v354_v52  ;;  %v364_v58 = vadd.f32 %v361_v56, %v355_v53  ;;  %v365_v59 = vadd.f32 %v361_v56, %v356_v54  ;;  %v366_v60 = vadd.f32 %v361_v56, %v357_v55 }
 0x1d2   : > { %367 = vst [vmem:[%s285_s14] sm:$0xff] %v363_v57 }
 0x1d3   : > { %368 = vst [vmem:[%s285_s14 + $0x8] sm:$0xff] %v364_v58 }
 0x1d4   : > { %369 = vst [vmem:[%s285_s14 + $0x10] sm:$0xff] %v365_v59 }
 0x1d5   : > { %370 = vst [vmem:[%s285_s14 + $0x18] sm:$0xff] %v366_v60 }
 0x1d6   : > { %682 = shalt.err (!%p679_p4)
}
 0x1d7   : > { %s732_s29 = smov 256   ;;  %s733_s8 = smov 1024  }
 0x1d8   : > { %s734_s10 = smov 16  }
 0x1d9   : > { %534 = dma.vmem_to_hbm [thread:$0]  (%p809_p10), %s385_s20, 512, %s387_s17, %s372_s19, %s732_s29, %s733_s8, %s734_s10  }
 0x1da PF: > { %p548_p13 = scmp.ge.s32.totalorder %s725_s18, 2  ;;  %s401_s23 = sand.u32 1, %s713_s15  }
 0x1db   : > { %s402_s25 = scalar_lea.sflag [#allocation4], %s401_s23 }
 0x1dc   : > { %p544_p5 = pnand %p548_p13, %p813_p11 }
 0x1de   : > { %p545_p7 = pneg %p544_p5 }
 0x1e0   : > { %708 = dma.done.wait (%p545_p7), %s402_s25, 512  }
 0x1e1   : > { %710 = vsyncadd (%p545_p7), %s402_s25, 4294966784  ;;  %s977_s7 = sld [smem:[#allocation11_spill]]  ;;  %p20_p8 = scmp.ge.s32.totalorder %s785_s21, 6  }
 0x1e2   : > { %s978_s17 = sld [smem:[#allocation12_spill]]  ;;  %s979_s15 = smov %s717_s16 }
 0x1e3   : > { %s981_s18 = smov %s785_s21  ;;  %22 = sbr.rel (!%p20_p8) target bundleno = 9 (0x9), region = 100 }
 0x1e7   : > { %s980_s16 = smov %s977_s7 }
 0x1e8   :  { %408 = vsyncpa [#allocation3], 1 }
 0x1e9   :  { %410 = vsyncpa [#allocation3 + $0x1], 1 }
 0x1ea   :  { %411 = vsyncpa [#allocation6], 1 }
 0x1eb   :  { %413 = vsyncpa [#allocation6 + $0x1], 1 }
 0x1ec   :  { %414 = vsyncpa [#allocation4], 1 }
 0x1ed   :  { %416 = vsyncpa [#allocation4 + $0x1], 1 }

</bundles_post_ra>
